<compile_context>
chip_gen: v6e
topology: v6e:2x2x1
jax: 0.10.0
libtpu: 0.0.40
codegen_flags: <defaults>
</compile_context>

<pallas_src>
import functools
import math

import jax
import jax.numpy as jnp
from jax import lax
from jax.experimental import pallas as pl
from jax.experimental.pallas import tpu as pltpu


def _cross_attention_kernel(hid_ref, enc_ref,
                            wq_ref, bq_ref, wk_ref, bk_ref,
                            wv_ref, bv_ref, wo_ref, bo_ref,
                            out_ref, *, num_heads, head_dim):
    # hid_ref: (Bblk, Sq, H)  enc_ref: (Bblk, Sk, E)  out_ref: (Bblk, Sq, H)
    bblk, Sq, H = hid_ref.shape
    _, Sk, E = enc_ref.shape

    # Flatten the batch block so projection matmuls have M = Bblk*S rows.
    hid = hid_ref[...].reshape(bblk * Sq, H).astype(jnp.float32)   # (Bblk*Sq, H)
    enc = enc_ref[...].reshape(bblk * Sk, E).astype(jnp.float32)   # (Bblk*Sk, E)

    # Weights arrive pre-transposed to (in, out); biases as (1, H).
    wq = wq_ref[...].astype(jnp.float32)   # (H, H)
    wk = wk_ref[...].astype(jnp.float32)   # (E, H)
    wv = wv_ref[...].astype(jnp.float32)   # (E, H)
    wo = wo_ref[...].astype(jnp.float32)   # (H, H)
    bq = bq_ref[...].astype(jnp.float32)
    bk = bk_ref[...].astype(jnp.float32)
    bv = bv_ref[...].astype(jnp.float32)
    bo = bo_ref[...].astype(jnp.float32)

    scale = 1.0 / math.sqrt(head_dim)

    # Linear projections: y = x @ W + b (PyTorch Linear, W stored as (in, out)).
    q = jnp.dot(hid, wq, preferred_element_type=jnp.float32) + bq   # (Bblk*Sq, H)
    k = jnp.dot(enc, wk, preferred_element_type=jnp.float32) + bk   # (Bblk*Sk, H)
    v = jnp.dot(enc, wv, preferred_element_type=jnp.float32) + bv   # (Bblk*Sk, H)
    q = q * scale                                                   # fold 1/sqrt(Dh) once

    # Contract last dim of lhs with last dim of rhs (Q @ K^T without transpose).
    contract_last = (((1,), (1,)), ((), ()))

    for b in range(bblk):                       # static unroll; bblk is small
        qb = q[b * Sq:(b + 1) * Sq, :]          # (Sq, H)
        kb = k[b * Sk:(b + 1) * Sk, :]          # (Sk, H)
        vb = v[b * Sk:(b + 1) * Sk, :]          # (Sk, H)

        acc = jnp.zeros((Sq, H), jnp.float32)
        for h in range(num_heads):              # static unroll over heads
            sl = slice(h * head_dim, (h + 1) * head_dim)
            qh = qb[:, sl]                      # (Sq, Dh)
            kh = kb[:, sl]                      # (Sk, Dh)
            vh = vb[:, sl]                      # (Sk, Dh)

            scores = lax.dot_general(qh, kh, contract_last,
                                     preferred_element_type=jnp.float32)  # (Sq, Sk)
            scores = scores - jnp.max(scores, axis=-1, keepdims=True)
            p = jnp.exp(scores)
            inv = pl.reciprocal(jnp.sum(p, axis=-1, keepdims=True), approx=True)
            probs = p * inv                     # softmax (attn_dropout = identity)

            ctx = jnp.dot(probs, vh, preferred_element_type=jnp.float32)  # (Sq, Dh)
            # Head-concat + output projection fused as an MXU accumulation
            # (no lane-axis concatenate, no relayout).
            acc = acc + jnp.dot(ctx, wo[sl, :], preferred_element_type=jnp.float32)

        out_ref[b] = (acc + bo).astype(out_ref.dtype)   # resid_dropout = identity


def cross_attention(hidden_states, encoder_hidden_states, params, num_heads,
                    *, batch_block=None):
    B, Sq, H = hidden_states.shape
    Bk, Sk, E = encoder_hidden_states.shape
    assert Bk == B
    assert H % num_heads == 0
    head_dim = H // num_heads

    if batch_block is None:
        batch_block = 1
        for cand in (8, 4, 2):
            if B % cand == 0:
                batch_block = cand
                break
    assert B % batch_block == 0
    grid = (B // batch_block,)

    # Pre-transpose weights once here ((out,in) -> (in,out)); biases to (1, H).
    wq_t = jnp.transpose(params["wq"])          # (H, H)
    wk_t = jnp.transpose(params["wk"])          # (E, H)
    wv_t = jnp.transpose(params["wv"])          # (E, H)
    wo_t = jnp.transpose(params["wo"])          # (H, H)
    bq = params["bq"].reshape(1, H)
    bk = params["bk"].reshape(1, H)
    bv = params["bv"].reshape(1, H)
    bo = params["bo"].reshape(1, H)

    kernel = functools.partial(_cross_attention_kernel,
                               num_heads=num_heads, head_dim=head_dim)

    def const_spec(shape):
        # Weights/biases are constant across the grid (index_map always (0, 0)),
        # so the pipeline only fetches them once.
        return pl.BlockSpec(shape, lambda i: (0,) * len(shape))

    call = pl.pallas_call(
        kernel,
        out_shape=jax.ShapeDtypeStruct((B, Sq, H), hidden_states.dtype),
        grid_spec=pltpu.PrefetchScalarGridSpec(
            num_scalar_prefetch=0,
            grid=grid,
            in_specs=[
                pl.BlockSpec((batch_block, Sq, H), lambda i: (i, 0, 0)),
                pl.BlockSpec((batch_block, Sk, E), lambda i: (i, 0, 0)),
                const_spec((H, H)), const_spec((1, H)),    # Wq, bq
                const_spec((E, H)), const_spec((1, H)),    # Wk, bk
                const_spec((E, H)), const_spec((1, H)),    # Wv, bv
                const_spec((H, H)), const_spec((1, H)),    # Wo, bo
            ],
            out_specs=pl.BlockSpec((batch_block, Sq, H), lambda i: (i, 0, 0)),
        ),
        compiler_params=pltpu.CompilerParams(
            dimension_semantics=("parallel",),
            vmem_limit_bytes=64 * 1024 * 1024),
    )

    return call(hidden_states, encoder_hidden_states,
                wq_t, bq, wk_t, bk, wv_t, bv, wo_t, bo)


def reference(hidden_states, encoder_hidden_states, params, num_heads):
    # Plain-JAX reference mirroring the PyTorch module (dropout = identity).
    B, Sq, H = hidden_states.shape
    _, Sk, E = encoder_hidden_states.shape
    Dh = H // num_heads

    def lin(x, w, b):
        return jnp.einsum("bsi,oi->bso", x, w) + b

    q = lin(hidden_states, params["wq"], params["bq"])
    k = lin(encoder_hidden_states, params["wk"], params["bk"])
    v = lin(encoder_hidden_states, params["wv"], params["bv"])

    def split(x, S):
        return x.reshape(B, S, num_heads, Dh).transpose(0, 2, 1, 3)

    qh, kh, vh = split(q, Sq), split(k, Sk), split(v, Sk)
    scores = jnp.einsum("bhqd,bhkd->bhqk", qh, kh) / math.sqrt(Dh)
    probs = jax.nn.softmax(scores, axis=-1)
    ctx = jnp.einsum("bhqk,bhkd->bhqd", probs, vh)
    ctx = ctx.transpose(0, 2, 1, 3).reshape(B, Sq, H)
    return lin(ctx, params["wo"], params["bo"])


if __name__ == "__main__":
    # Small config consistent with the module.
    B, Sq, Sk = 2, 8, 16
    hidden_size = 32
    encoder_hidden_size = 48
    num_heads = 4

    key = jax.random.PRNGKey(0)
    ks = jax.random.split(key, 10)

    def init_linear(k, out_f, in_f):
        bound = 1.0 / math.sqrt(in_f)
        kw, kb = jax.random.split(k)
        w = jax.random.uniform(kw, (out_f, in_f), jnp.float32, -bound, bound)
        b = jax.random.uniform(kb, (out_f,), jnp.float32, -bound, bound)
        return w, b

    wq, bq = init_linear(ks[0], hidden_size, hidden_size)
    wk, bk = init_linear(ks[1], hidden_size, encoder_hidden_size)
    wv, bv = init_linear(ks[2], hidden_size, encoder_hidden_size)
    wo, bo = init_linear(ks[3], hidden_size, hidden_size)
    params = dict(wq=wq, bq=bq, wk=wk, bk=bk, wv=wv, bv=bv, wo=wo, bo=bo)

    hidden_states = jax.random.normal(ks[4], (B, Sq, hidden_size), jnp.float32)
    encoder_hidden_states = jax.random.normal(
        ks[5], (B, Sk, encoder_hidden_size), jnp.float32)

    out = cross_attention(hidden_states, encoder_hidden_states, params, num_heads)
    out = jax.block_until_ready(out)

    ref = reference(hidden_states, encoder_hidden_states, params, num_heads)
    assert out.shape == (B, Sq, hidden_size)
    # Slightly looser tolerance than exact f32 because of the approximate (EUP)
    # reciprocal in the softmax normalization.
    assert jnp.allclose(out, ref, atol=2e-3, rtol=2e-3), (
        float(jnp.max(jnp.abs(out - ref))))

    print("KERNEL_OK")
</pallas_src>

<mosaic_0001>
module attributes {stable_mosaic.version = 11 : i64} {
  func.func @_cross_attention_kernel(%arg0: i32, %arg1: memref<2x8x32xf32, #tpu.memory_space<vmem>>, %arg2: memref<2x16x48xf32, #tpu.memory_space<vmem>>, %arg3: memref<32x32xf32, #tpu.memory_space<vmem>>, %arg4: memref<1x32xf32, #tpu.memory_space<vmem>>, %arg5: memref<48x32xf32, #tpu.memory_space<vmem>>, %arg6: memref<1x32xf32, #tpu.memory_space<vmem>>, %arg7: memref<48x32xf32, #tpu.memory_space<vmem>>, %arg8: memref<1x32xf32, #tpu.memory_space<vmem>>, %arg9: memref<32x32xf32, #tpu.memory_space<vmem>>, %arg10: memref<1x32xf32, #tpu.memory_space<vmem>>, %arg11: memref<2x8x32xf32, #tpu.memory_space<vmem>>) attributes {dimension_semantics = [#tpu.dimension_semantics<parallel>], iteration_bounds = array<i64: 1>, scalar_prefetch = 0 : i64, scratch_operands = 0 : i64, tpu.core_type = #tpu.core_type<tc>, window_params = [{transform_indices = @transform_0, window_bounds = array<i64: 2, 8, 32>}, {transform_indices = @transform_1, window_bounds = array<i64: 2, 16, 48>}, {pipeline_mode = #tpu.pipeline_mode<synchronous>, transform_indices = @transform_2, window_bounds = array<i64: 32, 32>}, {pipeline_mode = #tpu.pipeline_mode<synchronous>, transform_indices = @transform_3, window_bounds = array<i64: 1, 32>}, {pipeline_mode = #tpu.pipeline_mode<synchronous>, transform_indices = @transform_4, window_bounds = array<i64: 48, 32>}, {pipeline_mode = #tpu.pipeline_mode<synchronous>, transform_indices = @transform_5, window_bounds = array<i64: 1, 32>}, {pipeline_mode = #tpu.pipeline_mode<synchronous>, transform_indices = @transform_6, window_bounds = array<i64: 48, 32>}, {pipeline_mode = #tpu.pipeline_mode<synchronous>, transform_indices = @transform_7, window_bounds = array<i64: 1, 32>}, {pipeline_mode = #tpu.pipeline_mode<synchronous>, transform_indices = @transform_8, window_bounds = array<i64: 32, 32>}, {pipeline_mode = #tpu.pipeline_mode<synchronous>, transform_indices = @transform_9, window_bounds = array<i64: 1, 32>}, {transform_indices = @transform_10, window_bounds = array<i64: 2, 8, 32>}]} {
    %c0 = arith.constant 0 : index
    %c0_0 = arith.constant 0 : index
    %c0_1 = arith.constant 0 : index
    %0 = vector.load %arg1[%c0, %c0_0, %c0_1] : memref<2x8x32xf32, #tpu.memory_space<vmem>>, vector<2x8x32xf32>
    %1 = vector.shape_cast %0 : vector<2x8x32xf32> to vector<16x32xf32>
    %c0_2 = arith.constant 0 : index
    %c0_3 = arith.constant 0 : index
    %c0_4 = arith.constant 0 : index
    %2 = vector.load %arg2[%c0_2, %c0_3, %c0_4] : memref<2x16x48xf32, #tpu.memory_space<vmem>>, vector<2x16x48xf32>
    %3 = vector.shape_cast %2 : vector<2x16x48xf32> to vector<32x48xf32>
    %c0_5 = arith.constant 0 : index
    %c0_6 = arith.constant 0 : index
    %4 = vector.load %arg3[%c0_5, %c0_6] : memref<32x32xf32, #tpu.memory_space<vmem>>, vector<32x32xf32>
    %c0_7 = arith.constant 0 : index
    %c0_8 = arith.constant 0 : index
    %5 = vector.load %arg5[%c0_7, %c0_8] : memref<48x32xf32, #tpu.memory_space<vmem>>, vector<48x32xf32>
    %c0_9 = arith.constant 0 : index
    %c0_10 = arith.constant 0 : index
    %6 = vector.load %arg7[%c0_9, %c0_10] : memref<48x32xf32, #tpu.memory_space<vmem>>, vector<48x32xf32>
    %c0_11 = arith.constant 0 : index
    %c0_12 = arith.constant 0 : index
    %7 = vector.load %arg9[%c0_11, %c0_12] : memref<32x32xf32, #tpu.memory_space<vmem>>, vector<32x32xf32>
    %c0_13 = arith.constant 0 : index
    %c0_14 = arith.constant 0 : index
    %8 = vector.load %arg4[%c0_13, %c0_14] : memref<1x32xf32, #tpu.memory_space<vmem>>, vector<1x32xf32>
    %c0_15 = arith.constant 0 : index
    %c0_16 = arith.constant 0 : index
    %9 = vector.load %arg6[%c0_15, %c0_16] : memref<1x32xf32, #tpu.memory_space<vmem>>, vector<1x32xf32>
    %c0_17 = arith.constant 0 : index
    %c0_18 = arith.constant 0 : index
    %10 = vector.load %arg8[%c0_17, %c0_18] : memref<1x32xf32, #tpu.memory_space<vmem>>, vector<1x32xf32>
    %c0_19 = arith.constant 0 : index
    %c0_20 = arith.constant 0 : index
    %11 = vector.load %arg10[%c0_19, %c0_20] : memref<1x32xf32, #tpu.memory_space<vmem>>, vector<1x32xf32>
    %cst = arith.constant dense<0.000000e+00> : vector<16x32xf32>
    %12 = tpu.matmul %1, %4, %cst {dimension_numbers = #tpu.dot_dimension_numbers<[1], [0], [0], [1], [0, 0, 1, 1], [], []>} : vector<16x32xf32>, vector<32x32xf32>, vector<16x32xf32> -> vector<16x32xf32>
    %13 = vector.broadcast %8 : vector<1x32xf32> to vector<16x32xf32>
    %14 = arith.addf %12, %13 : vector<16x32xf32>
    %cst_21 = arith.constant dense<0.000000e+00> : vector<32x32xf32>
    %15 = tpu.matmul %3, %5, %cst_21 {dimension_numbers = #tpu.dot_dimension_numbers<[1], [0], [0], [1], [0, 0, 1, 1], [], []>} : vector<32x48xf32>, vector<48x32xf32>, vector<32x32xf32> -> vector<32x32xf32>
    %16 = vector.broadcast %9 : vector<1x32xf32> to vector<32x32xf32>
    %17 = arith.addf %15, %16 : vector<32x32xf32>
    %cst_22 = arith.constant dense<0.000000e+00> : vector<32x32xf32>
    %18 = tpu.matmul %3, %6, %cst_22 {dimension_numbers = #tpu.dot_dimension_numbers<[1], [0], [0], [1], [0, 0, 1, 1], [], []>} : vector<32x48xf32>, vector<48x32xf32>, vector<32x32xf32> -> vector<32x32xf32>
    %19 = vector.broadcast %10 : vector<1x32xf32> to vector<32x32xf32>
    %20 = arith.addf %18, %19 : vector<32x32xf32>
    %cst_23 = arith.constant 0.353553385 : f32
    %21 = vector.broadcast %cst_23 : f32 to vector<16x32xf32>
    %22 = arith.mulf %14, %21 : vector<16x32xf32>
    %23 = vector.extract_strided_slice %22 {offsets = [0, 0], sizes = [8, 32], strides = [1, 1]} : vector<16x32xf32> to vector<8x32xf32>
    %24 = vector.extract_strided_slice %17 {offsets = [0, 0], sizes = [16, 32], strides = [1, 1]} : vector<32x32xf32> to vector<16x32xf32>
    %25 = vector.extract_strided_slice %20 {offsets = [0, 0], sizes = [16, 32], strides = [1, 1]} : vector<32x32xf32> to vector<16x32xf32>
    %cst_24 = arith.constant 0.000000e+00 : f32
    %26 = vector.broadcast %cst_24 : f32 to vector<8x32xf32>
    %27 = vector.extract_strided_slice %23 {offsets = [0, 0], sizes = [8, 8], strides = [1, 1]} : vector<8x32xf32> to vector<8x8xf32>
    %28 = vector.extract_strided_slice %24 {offsets = [0, 0], sizes = [16, 8], strides = [1, 1]} : vector<16x32xf32> to vector<16x8xf32>
    %29 = vector.extract_strided_slice %25 {offsets = [0, 0], sizes = [16, 8], strides = [1, 1]} : vector<16x32xf32> to vector<16x8xf32>
    %cst_25 = arith.constant dense<0.000000e+00> : vector<8x16xf32>
    %30 = tpu.matmul %27, %28, %cst_25 {dimension_numbers = #tpu.dot_dimension_numbers<[1], [1], [0], [0], [0, 0, 1, 0], [], []>} : vector<8x8xf32>, vector<16x8xf32>, vector<8x16xf32> -> vector<8x16xf32>
    %cst_26 = arith.constant dense<0xFF800000> : vector<8xf32>
    %31 = vector.multi_reduction <maximumf>, %30, %cst_26 [1] : vector<8x16xf32> to vector<8xf32>
    %32 = vector.shape_cast %31 : vector<8xf32> to vector<8x1xf32>
    %33 = vector.broadcast %32 : vector<8x1xf32> to vector<8x16xf32>
    %34 = arith.subf %30, %33 : vector<8x16xf32>
    %35 = math.exp %34 : vector<8x16xf32>
    %cst_27 = arith.constant dense<0.000000e+00> : vector<8xf32>
    %36 = vector.multi_reduction <add>, %35, %cst_27 [1] : vector<8x16xf32> to vector<8xf32>
    %37 = vector.shape_cast %36 : vector<8xf32> to vector<8x1xf32>
    %38 = tpu.reciprocal %37 {approx = true} : vector<8x1xf32> -> vector<8x1xf32>
    %39 = vector.broadcast %38 : vector<8x1xf32> to vector<8x16xf32>
    %40 = arith.mulf %35, %39 : vector<8x16xf32>
    %cst_28 = arith.constant dense<0.000000e+00> : vector<8x8xf32>
    %41 = tpu.matmul %40, %29, %cst_28 {dimension_numbers = #tpu.dot_dimension_numbers<[1], [0], [0], [1], [0, 0, 1, 1], [], []>} : vector<8x16xf32>, vector<16x8xf32>, vector<8x8xf32> -> vector<8x8xf32>
    %42 = vector.extract_strided_slice %7 {offsets = [0, 0], sizes = [8, 32], strides = [1, 1]} : vector<32x32xf32> to vector<8x32xf32>
    %cst_29 = arith.constant dense<0.000000e+00> : vector<8x32xf32>
    %43 = tpu.matmul %41, %42, %cst_29 {dimension_numbers = #tpu.dot_dimension_numbers<[1], [0], [0], [1], [0, 0, 1, 1], [], []>} : vector<8x8xf32>, vector<8x32xf32>, vector<8x32xf32> -> vector<8x32xf32>
    %44 = arith.addf %26, %43 : vector<8x32xf32>
    %45 = vector.extract_strided_slice %23 {offsets = [0, 8], sizes = [8, 8], strides = [1, 1]} : vector<8x32xf32> to vector<8x8xf32>
    %46 = vector.extract_strided_slice %24 {offsets = [0, 8], sizes = [16, 8], strides = [1, 1]} : vector<16x32xf32> to vector<16x8xf32>
    %47 = vector.extract_strided_slice %25 {offsets = [0, 8], sizes = [16, 8], strides = [1, 1]} : vector<16x32xf32> to vector<16x8xf32>
    %cst_30 = arith.constant dense<0.000000e+00> : vector<8x16xf32>
    %48 = tpu.matmul %45, %46, %cst_30 {dimension_numbers = #tpu.dot_dimension_numbers<[1], [1], [0], [0], [0, 0, 1, 0], [], []>} : vector<8x8xf32>, vector<16x8xf32>, vector<8x16xf32> -> vector<8x16xf32>
    %cst_31 = arith.constant dense<0xFF800000> : vector<8xf32>
    %49 = vector.multi_reduction <maximumf>, %48, %cst_31 [1] : vector<8x16xf32> to vector<8xf32>
    %50 = vector.shape_cast %49 : vector<8xf32> to vector<8x1xf32>
    %51 = vector.broadcast %50 : vector<8x1xf32> to vector<8x16xf32>
    %52 = arith.subf %48, %51 : vector<8x16xf32>
    %53 = math.exp %52 : vector<8x16xf32>
    %cst_32 = arith.constant dense<0.000000e+00> : vector<8xf32>
    %54 = vector.multi_reduction <add>, %53, %cst_32 [1] : vector<8x16xf32> to vector<8xf32>
    %55 = vector.shape_cast %54 : vector<8xf32> to vector<8x1xf32>
    %56 = tpu.reciprocal %55 {approx = true} : vector<8x1xf32> -> vector<8x1xf32>
    %57 = vector.broadcast %56 : vector<8x1xf32> to vector<8x16xf32>
    %58 = arith.mulf %53, %57 : vector<8x16xf32>
    %cst_33 = arith.constant dense<0.000000e+00> : vector<8x8xf32>
    %59 = tpu.matmul %58, %47, %cst_33 {dimension_numbers = #tpu.dot_dimension_numbers<[1], [0], [0], [1], [0, 0, 1, 1], [], []>} : vector<8x16xf32>, vector<16x8xf32>, vector<8x8xf32> -> vector<8x8xf32>
    %60 = vector.extract_strided_slice %7 {offsets = [8, 0], sizes = [8, 32], strides = [1, 1]} : vector<32x32xf32> to vector<8x32xf32>
    %cst_34 = arith.constant dense<0.000000e+00> : vector<8x32xf32>
    %61 = tpu.matmul %59, %60, %cst_34 {dimension_numbers = #tpu.dot_dimension_numbers<[1], [0], [0], [1], [0, 0, 1, 1], [], []>} : vector<8x8xf32>, vector<8x32xf32>, vector<8x32xf32> -> vector<8x32xf32>
    %62 = arith.addf %44, %61 : vector<8x32xf32>
    %63 = vector.extract_strided_slice %23 {offsets = [0, 16], sizes = [8, 8], strides = [1, 1]} : vector<8x32xf32> to vector<8x8xf32>
    %64 = vector.extract_strided_slice %24 {offsets = [0, 16], sizes = [16, 8], strides = [1, 1]} : vector<16x32xf32> to vector<16x8xf32>
    %65 = vector.extract_strided_slice %25 {offsets = [0, 16], sizes = [16, 8], strides = [1, 1]} : vector<16x32xf32> to vector<16x8xf32>
    %cst_35 = arith.constant dense<0.000000e+00> : vector<8x16xf32>
    %66 = tpu.matmul %63, %64, %cst_35 {dimension_numbers = #tpu.dot_dimension_numbers<[1], [1], [0], [0], [0, 0, 1, 0], [], []>} : vector<8x8xf32>, vector<16x8xf32>, vector<8x16xf32> -> vector<8x16xf32>
    %cst_36 = arith.constant dense<0xFF800000> : vector<8xf32>
    %67 = vector.multi_reduction <maximumf>, %66, %cst_36 [1] : vector<8x16xf32> to vector<8xf32>
    %68 = vector.shape_cast %67 : vector<8xf32> to vector<8x1xf32>
    %69 = vector.broadcast %68 : vector<8x1xf32> to vector<8x16xf32>
    %70 = arith.subf %66, %69 : vector<8x16xf32>
    %71 = math.exp %70 : vector<8x16xf32>
    %cst_37 = arith.constant dense<0.000000e+00> : vector<8xf32>
    %72 = vector.multi_reduction <add>, %71, %cst_37 [1] : vector<8x16xf32> to vector<8xf32>
    %73 = vector.shape_cast %72 : vector<8xf32> to vector<8x1xf32>
    %74 = tpu.reciprocal %73 {approx = true} : vector<8x1xf32> -> vector<8x1xf32>
    %75 = vector.broadcast %74 : vector<8x1xf32> to vector<8x16xf32>
    %76 = arith.mulf %71, %75 : vector<8x16xf32>
    %cst_38 = arith.constant dense<0.000000e+00> : vector<8x8xf32>
    %77 = tpu.matmul %76, %65, %cst_38 {dimension_numbers = #tpu.dot_dimension_numbers<[1], [0], [0], [1], [0, 0, 1, 1], [], []>} : vector<8x16xf32>, vector<16x8xf32>, vector<8x8xf32> -> vector<8x8xf32>
    %78 = vector.extract_strided_slice %7 {offsets = [16, 0], sizes = [8, 32], strides = [1, 1]} : vector<32x32xf32> to vector<8x32xf32>
    %cst_39 = arith.constant dense<0.000000e+00> : vector<8x32xf32>
    %79 = tpu.matmul %77, %78, %cst_39 {dimension_numbers = #tpu.dot_dimension_numbers<[1], [0], [0], [1], [0, 0, 1, 1], [], []>} : vector<8x8xf32>, vector<8x32xf32>, vector<8x32xf32> -> vector<8x32xf32>
    %80 = arith.addf %62, %79 : vector<8x32xf32>
    %81 = vector.extract_strided_slice %23 {offsets = [0, 24], sizes = [8, 8], strides = [1, 1]} : vector<8x32xf32> to vector<8x8xf32>
    %82 = vector.extract_strided_slice %24 {offsets = [0, 24], sizes = [16, 8], strides = [1, 1]} : vector<16x32xf32> to vector<16x8xf32>
    %83 = vector.extract_strided_slice %25 {offsets = [0, 24], sizes = [16, 8], strides = [1, 1]} : vector<16x32xf32> to vector<16x8xf32>
    %cst_40 = arith.constant dense<0.000000e+00> : vector<8x16xf32>
    %84 = tpu.matmul %81, %82, %cst_40 {dimension_numbers = #tpu.dot_dimension_numbers<[1], [1], [0], [0], [0, 0, 1, 0], [], []>} : vector<8x8xf32>, vector<16x8xf32>, vector<8x16xf32> -> vector<8x16xf32>
    %cst_41 = arith.constant dense<0xFF800000> : vector<8xf32>
    %85 = vector.multi_reduction <maximumf>, %84, %cst_41 [1] : vector<8x16xf32> to vector<8xf32>
    %86 = vector.shape_cast %85 : vector<8xf32> to vector<8x1xf32>
    %87 = vector.broadcast %86 : vector<8x1xf32> to vector<8x16xf32>
    %88 = arith.subf %84, %87 : vector<8x16xf32>
    %89 = math.exp %88 : vector<8x16xf32>
    %cst_42 = arith.constant dense<0.000000e+00> : vector<8xf32>
    %90 = vector.multi_reduction <add>, %89, %cst_42 [1] : vector<8x16xf32> to vector<8xf32>
    %91 = vector.shape_cast %90 : vector<8xf32> to vector<8x1xf32>
    %92 = tpu.reciprocal %91 {approx = true} : vector<8x1xf32> -> vector<8x1xf32>
    %93 = vector.broadcast %92 : vector<8x1xf32> to vector<8x16xf32>
    %94 = arith.mulf %89, %93 : vector<8x16xf32>
    %cst_43 = arith.constant dense<0.000000e+00> : vector<8x8xf32>
    %95 = tpu.matmul %94, %83, %cst_43 {dimension_numbers = #tpu.dot_dimension_numbers<[1], [0], [0], [1], [0, 0, 1, 1], [], []>} : vector<8x16xf32>, vector<16x8xf32>, vector<8x8xf32> -> vector<8x8xf32>
    %96 = vector.extract_strided_slice %7 {offsets = [24, 0], sizes = [8, 32], strides = [1, 1]} : vector<32x32xf32> to vector<8x32xf32>
    %cst_44 = arith.constant dense<0.000000e+00> : vector<8x32xf32>
    %97 = tpu.matmul %95, %96, %cst_44 {dimension_numbers = #tpu.dot_dimension_numbers<[1], [0], [0], [1], [0, 0, 1, 1], [], []>} : vector<8x8xf32>, vector<8x32xf32>, vector<8x32xf32> -> vector<8x32xf32>
    %98 = arith.addf %80, %97 : vector<8x32xf32>
    %99 = vector.broadcast %11 : vector<1x32xf32> to vector<8x32xf32>
    %100 = arith.addf %98, %99 : vector<8x32xf32>
    %c0_45 = arith.constant 0 : index
    %c0_46 = arith.constant 0 : index
    %c0_47 = arith.constant 0 : index
    %101 = vector.load %arg11[%c0_45, %c0_46, %c0_47] : memref<2x8x32xf32, #tpu.memory_space<vmem>>, vector<1x8x32xf32>
    %102 = vector.shape_cast %101 : vector<1x8x32xf32> to vector<8x32xf32>
    %103 = vector.shape_cast %100 : vector<8x32xf32> to vector<1x8x32xf32>
    tpu.vector_store %arg11[%c0_45, %c0_46, %c0_47], %103 {strides = array<i32>} : memref<2x8x32xf32, #tpu.memory_space<vmem>>, vector<1x8x32xf32>,
    %104 = vector.extract_strided_slice %22 {offsets = [8, 0], sizes = [8, 32], strides = [1, 1]} : vector<16x32xf32> to vector<8x32xf32>
    %105 = vector.extract_strided_slice %17 {offsets = [16, 0], sizes = [16, 32], strides = [1, 1]} : vector<32x32xf32> to vector<16x32xf32>
    %106 = vector.extract_strided_slice %20 {offsets = [16, 0], sizes = [16, 32], strides = [1, 1]} : vector<32x32xf32> to vector<16x32xf32>
    %cst_48 = arith.constant 0.000000e+00 : f32
    %107 = vector.broadcast %cst_48 : f32 to vector<8x32xf32>
    %108 = vector.extract_strided_slice %104 {offsets = [0, 0], sizes = [8, 8], strides = [1, 1]} : vector<8x32xf32> to vector<8x8xf32>
    %109 = vector.extract_strided_slice %105 {offsets = [0, 0], sizes = [16, 8], strides = [1, 1]} : vector<16x32xf32> to vector<16x8xf32>
    %110 = vector.extract_strided_slice %106 {offsets = [0, 0], sizes = [16, 8], strides = [1, 1]} : vector<16x32xf32> to vector<16x8xf32>
    %cst_49 = arith.constant dense<0.000000e+00> : vector<8x16xf32>
    %111 = tpu.matmul %108, %109, %cst_49 {dimension_numbers = #tpu.dot_dimension_numbers<[1], [1], [0], [0], [0, 0, 1, 0], [], []>} : vector<8x8xf32>, vector<16x8xf32>, vector<8x16xf32> -> vector<8x16xf32>
    %cst_50 = arith.constant dense<0xFF800000> : vector<8xf32>
    %112 = vector.multi_reduction <maximumf>, %111, %cst_50 [1] : vector<8x16xf32> to vector<8xf32>
    %113 = vector.shape_cast %112 : vector<8xf32> to vector<8x1xf32>
    %114 = vector.broadcast %113 : vector<8x1xf32> to vector<8x16xf32>
    %115 = arith.subf %111, %114 : vector<8x16xf32>
    %116 = math.exp %115 : vector<8x16xf32>
    %cst_51 = arith.constant dense<0.000000e+00> : vector<8xf32>
    %117 = vector.multi_reduction <add>, %116, %cst_51 [1] : vector<8x16xf32> to vector<8xf32>
    %118 = vector.shape_cast %117 : vector<8xf32> to vector<8x1xf32>
    %119 = tpu.reciprocal %118 {approx = true} : vector<8x1xf32> -> vector<8x1xf32>
    %120 = vector.broadcast %119 : vector<8x1xf32> to vector<8x16xf32>
    %121 = arith.mulf %116, %120 : vector<8x16xf32>
    %cst_52 = arith.constant dense<0.000000e+00> : vector<8x8xf32>
    %122 = tpu.matmul %121, %110, %cst_52 {dimension_numbers = #tpu.dot_dimension_numbers<[1], [0], [0], [1], [0, 0, 1, 1], [], []>} : vector<8x16xf32>, vector<16x8xf32>, vector<8x8xf32> -> vector<8x8xf32>
    %123 = vector.extract_strided_slice %7 {offsets = [0, 0], sizes = [8, 32], strides = [1, 1]} : vector<32x32xf32> to vector<8x32xf32>
    %cst_53 = arith.constant dense<0.000000e+00> : vector<8x32xf32>
    %124 = tpu.matmul %122, %123, %cst_53 {dimension_numbers = #tpu.dot_dimension_numbers<[1], [0], [0], [1], [0, 0, 1, 1], [], []>} : vector<8x8xf32>, vector<8x32xf32>, vector<8x32xf32> -> vector<8x32xf32>
    %125 = arith.addf %107, %124 : vector<8x32xf32>
    %126 = vector.extract_strided_slice %104 {offsets = [0, 8], sizes = [8, 8], strides = [1, 1]} : vector<8x32xf32> to vector<8x8xf32>
    %127 = vector.extract_strided_slice %105 {offsets = [0, 8], sizes = [16, 8], strides = [1, 1]} : vector<16x32xf32> to vector<16x8xf32>
    %128 = vector.extract_strided_slice %106 {offsets = [0, 8], sizes = [16, 8], strides = [1, 1]} : vector<16x32xf32> to vector<16x8xf32>
    %cst_54 = arith.constant dense<0.000000e+00> : vector<8x16xf32>
    %129 = tpu.matmul %126, %127, %cst_54 {dimension_numbers = #tpu.dot_dimension_numbers<[1], [1], [0], [0], [0, 0, 1, 0], [], []>} : vector<8x8xf32>, vector<16x8xf32>, vector<8x16xf32> -> vector<8x16xf32>
    %cst_55 = arith.constant dense<0xFF800000> : vector<8xf32>
    %130 = vector.multi_reduction <maximumf>, %129, %cst_55 [1] : vector<8x16xf32> to vector<8xf32>
    %131 = vector.shape_cast %130 : vector<8xf32> to vector<8x1xf32>
    %132 = vector.broadcast %131 : vector<8x1xf32> to vector<8x16xf32>
    %133 = arith.subf %129, %132 : vector<8x16xf32>
    %134 = math.exp %133 : vector<8x16xf32>
    %cst_56 = arith.constant dense<0.000000e+00> : vector<8xf32>
    %135 = vector.multi_reduction <add>, %134, %cst_56 [1] : vector<8x16xf32> to vector<8xf32>
    %136 = vector.shape_cast %135 : vector<8xf32> to vector<8x1xf32>
    %137 = tpu.reciprocal %136 {approx = true} : vector<8x1xf32> -> vector<8x1xf32>
    %138 = vector.broadcast %137 : vector<8x1xf32> to vector<8x16xf32>
    %139 = arith.mulf %134, %138 : vector<8x16xf32>
    %cst_57 = arith.constant dense<0.000000e+00> : vector<8x8xf32>
    %140 = tpu.matmul %139, %128, %cst_57 {dimension_numbers = #tpu.dot_dimension_numbers<[1], [0], [0], [1], [0, 0, 1, 1], [], []>} : vector<8x16xf32>, vector<16x8xf32>, vector<8x8xf32> -> vector<8x8xf32>
    %141 = vector.extract_strided_slice %7 {offsets = [8, 0], sizes = [8, 32], strides = [1, 1]} : vector<32x32xf32> to vector<8x32xf32>
    %cst_58 = arith.constant dense<0.000000e+00> : vector<8x32xf32>
    %142 = tpu.matmul %140, %141, %cst_58 {dimension_numbers = #tpu.dot_dimension_numbers<[1], [0], [0], [1], [0, 0, 1, 1], [], []>} : vector<8x8xf32>, vector<8x32xf32>, vector<8x32xf32> -> vector<8x32xf32>
    %143 = arith.addf %125, %142 : vector<8x32xf32>
    %144 = vector.extract_strided_slice %104 {offsets = [0, 16], sizes = [8, 8], strides = [1, 1]} : vector<8x32xf32> to vector<8x8xf32>
    %145 = vector.extract_strided_slice %105 {offsets = [0, 16], sizes = [16, 8], strides = [1, 1]} : vector<16x32xf32> to vector<16x8xf32>
    %146 = vector.extract_strided_slice %106 {offsets = [0, 16], sizes = [16, 8], strides = [1, 1]} : vector<16x32xf32> to vector<16x8xf32>
    %cst_59 = arith.constant dense<0.000000e+00> : vector<8x16xf32>
    %147 = tpu.matmul %144, %145, %cst_59 {dimension_numbers = #tpu.dot_dimension_numbers<[1], [1], [0], [0], [0, 0, 1, 0], [], []>} : vector<8x8xf32>, vector<16x8xf32>, vector<8x16xf32> -> vector<8x16xf32>
    %cst_60 = arith.constant dense<0xFF800000> : vector<8xf32>
    %148 = vector.multi_reduction <maximumf>, %147, %cst_60 [1] : vector<8x16xf32> to vector<8xf32>
    %149 = vector.shape_cast %148 : vector<8xf32> to vector<8x1xf32>
    %150 = vector.broadcast %149 : vector<8x1xf32> to vector<8x16xf32>
    %151 = arith.subf %147, %150 : vector<8x16xf32>
    %152 = math.exp %151 : vector<8x16xf32>
    %cst_61 = arith.constant dense<0.000000e+00> : vector<8xf32>
    %153 = vector.multi_reduction <add>, %152, %cst_61 [1] : vector<8x16xf32> to vector<8xf32>
    %154 = vector.shape_cast %153 : vector<8xf32> to vector<8x1xf32>
    %155 = tpu.reciprocal %154 {approx = true} : vector<8x1xf32> -> vector<8x1xf32>
    %156 = vector.broadcast %155 : vector<8x1xf32> to vector<8x16xf32>
    %157 = arith.mulf %152, %156 : vector<8x16xf32>
    %cst_62 = arith.constant dense<0.000000e+00> : vector<8x8xf32>
    %158 = tpu.matmul %157, %146, %cst_62 {dimension_numbers = #tpu.dot_dimension_numbers<[1], [0], [0], [1], [0, 0, 1, 1], [], []>} : vector<8x16xf32>, vector<16x8xf32>, vector<8x8xf32> -> vector<8x8xf32>
    %159 = vector.extract_strided_slice %7 {offsets = [16, 0], sizes = [8, 32], strides = [1, 1]} : vector<32x32xf32> to vector<8x32xf32>
    %cst_63 = arith.constant dense<0.000000e+00> : vector<8x32xf32>
    %160 = tpu.matmul %158, %159, %cst_63 {dimension_numbers = #tpu.dot_dimension_numbers<[1], [0], [0], [1], [0, 0, 1, 1], [], []>} : vector<8x8xf32>, vector<8x32xf32>, vector<8x32xf32> -> vector<8x32xf32>
    %161 = arith.addf %143, %160 : vector<8x32xf32>
    %162 = vector.extract_strided_slice %104 {offsets = [0, 24], sizes = [8, 8], strides = [1, 1]} : vector<8x32xf32> to vector<8x8xf32>
    %163 = vector.extract_strided_slice %105 {offsets = [0, 24], sizes = [16, 8], strides = [1, 1]} : vector<16x32xf32> to vector<16x8xf32>
    %164 = vector.extract_strided_slice %106 {offsets = [0, 24], sizes = [16, 8], strides = [1, 1]} : vector<16x32xf32> to vector<16x8xf32>
    %cst_64 = arith.constant dense<0.000000e+00> : vector<8x16xf32>
    %165 = tpu.matmul %162, %163, %cst_64 {dimension_numbers = #tpu.dot_dimension_numbers<[1], [1], [0], [0], [0, 0, 1, 0], [], []>} : vector<8x8xf32>, vector<16x8xf32>, vector<8x16xf32> -> vector<8x16xf32>
    %cst_65 = arith.constant dense<0xFF800000> : vector<8xf32>
    %166 = vector.multi_reduction <maximumf>, %165, %cst_65 [1] : vector<8x16xf32> to vector<8xf32>
    %167 = vector.shape_cast %166 : vector<8xf32> to vector<8x1xf32>
    %168 = vector.broadcast %167 : vector<8x1xf32> to vector<8x16xf32>
    %169 = arith.subf %165, %168 : vector<8x16xf32>
    %170 = math.exp %169 : vector<8x16xf32>
    %cst_66 = arith.constant dense<0.000000e+00> : vector<8xf32>
    %171 = vector.multi_reduction <add>, %170, %cst_66 [1] : vector<8x16xf32> to vector<8xf32>
    %172 = vector.shape_cast %171 : vector<8xf32> to vector<8x1xf32>
    %173 = tpu.reciprocal %172 {approx = true} : vector<8x1xf32> -> vector<8x1xf32>
    %174 = vector.broadcast %173 : vector<8x1xf32> to vector<8x16xf32>
    %175 = arith.mulf %170, %174 : vector<8x16xf32>
    %cst_67 = arith.constant dense<0.000000e+00> : vector<8x8xf32>
    %176 = tpu.matmul %175, %164, %cst_67 {dimension_numbers = #tpu.dot_dimension_numbers<[1], [0], [0], [1], [0, 0, 1, 1], [], []>} : vector<8x16xf32>, vector<16x8xf32>, vector<8x8xf32> -> vector<8x8xf32>
    %177 = vector.extract_strided_slice %7 {offsets = [24, 0], sizes = [8, 32], strides = [1, 1]} : vector<32x32xf32> to vector<8x32xf32>
    %cst_68 = arith.constant dense<0.000000e+00> : vector<8x32xf32>
    %178 = tpu.matmul %176, %177, %cst_68 {dimension_numbers = #tpu.dot_dimension_numbers<[1], [0], [0], [1], [0, 0, 1, 1], [], []>} : vector<8x8xf32>, vector<8x32xf32>, vector<8x32xf32> -> vector<8x32xf32>
    %179 = arith.addf %161, %178 : vector<8x32xf32>
    %180 = vector.broadcast %11 : vector<1x32xf32> to vector<8x32xf32>
    %181 = arith.addf %179, %180 : vector<8x32xf32>
    %c1 = arith.constant 1 : index
    %c0_69 = arith.constant 0 : index
    %c0_70 = arith.constant 0 : index
    %182 = vector.load %arg11[%c1, %c0_69, %c0_70] : memref<2x8x32xf32, #tpu.memory_space<vmem>>, vector<1x8x32xf32>
    %183 = vector.shape_cast %182 : vector<1x8x32xf32> to vector<8x32xf32>
    %184 = vector.shape_cast %181 : vector<8x32xf32> to vector<1x8x32xf32>
    tpu.vector_store %arg11[%c1, %c0_69, %c0_70], %184 {strides = array<i32>} : memref<2x8x32xf32, #tpu.memory_space<vmem>>, vector<1x8x32xf32>,
    return
  }
  func.func @transform_0(%arg0: i32) -> (i32, i32, i32) {
    %c0_i32 = arith.constant 0 : i32
    %c0_i32_0 = arith.constant 0 : i32
    %c0_i32_1 = arith.constant 0 : i32
    return %arg0, %c0_i32, %c0_i32_0 : i32, i32, i32
  }
  func.func @transform_1(%arg0: i32) -> (i32, i32, i32) {
    %c0_i32 = arith.constant 0 : i32
    %c0_i32_0 = arith.constant 0 : i32
    %c0_i32_1 = arith.constant 0 : i32
    return %arg0, %c0_i32, %c0_i32_0 : i32, i32, i32
  }
  func.func @transform_2(%arg0: i32) -> (i32, i32) {
    %c0_i32 = arith.constant 0 : i32
    %c0_i32_0 = arith.constant 0 : i32
    %c0_i32_1 = arith.constant 0 : i32
    return %c0_i32, %c0_i32_0 : i32, i32
  }
  func.func @transform_3(%arg0: i32) -> (i32, i32) {
    %c0_i32 = arith.constant 0 : i32
    %c0_i32_0 = arith.constant 0 : i32
    %c0_i32_1 = arith.constant 0 : i32
    return %c0_i32, %c0_i32_0 : i32, i32
  }
  func.func @transform_4(%arg0: i32) -> (i32, i32) {
    %c0_i32 = arith.constant 0 : i32
    %c0_i32_0 = arith.constant 0 : i32
    %c0_i32_1 = arith.constant 0 : i32
    return %c0_i32, %c0_i32_0 : i32, i32
  }
  func.func @transform_5(%arg0: i32) -> (i32, i32) {
    %c0_i32 = arith.constant 0 : i32
    %c0_i32_0 = arith.constant 0 : i32
    %c0_i32_1 = arith.constant 0 : i32
    return %c0_i32, %c0_i32_0 : i32, i32
  }
  func.func @transform_6(%arg0: i32) -> (i32, i32) {
    %c0_i32 = arith.constant 0 : i32
    %c0_i32_0 = arith.constant 0 : i32
    %c0_i32_1 = arith.constant 0 : i32
    return %c0_i32, %c0_i32_0 : i32, i32
  }
  func.func @transform_7(%arg0: i32) -> (i32, i32) {
    %c0_i32 = arith.constant 0 : i32
    %c0_i32_0 = arith.constant 0 : i32
    %c0_i32_1 = arith.constant 0 : i32
    return %c0_i32, %c0_i32_0 : i32, i32
  }
  func.func @transform_8(%arg0: i32) -> (i32, i32) {
    %c0_i32 = arith.constant 0 : i32
    %c0_i32_0 = arith.constant 0 : i32
    %c0_i32_1 = arith.constant 0 : i32
    return %c0_i32, %c0_i32_0 : i32, i32
  }
  func.func @transform_9(%arg0: i32) -> (i32, i32) {
    %c0_i32 = arith.constant 0 : i32
    %c0_i32_0 = arith.constant 0 : i32
    %c0_i32_1 = arith.constant 0 : i32
    return %c0_i32, %c0_i32_0 : i32, i32
  }
  func.func @transform_10(%arg0: i32) -> (i32, i32, i32) {
    %c0_i32 = arith.constant 0 : i32
    %c0_i32_0 = arith.constant 0 : i32
    %c0_i32_1 = arith.constant 0 : i32
    return %arg0, %c0_i32, %c0_i32_0 : i32, i32, i32
  }
}

</mosaic_0001>

<bundles_post_ra>
// kernel: tpu_custom_call.1
= control target key start
LH: loop header
LB: loop body
LE: loop exit
PB: predicated region body
PF: predicated region fallthrough
CT: control target
= control target key end

     0   :  { %s3190_s0 = inlined_call_operand.vmem [shape: f32[2,8,32], index: 0, kind: input, shape index: {}]   ;;  %s3191_s1 = inlined_call_operand.vmem [shape: f32[2,16,48], index: 1, kind: input, shape index: {}]   ;;  %s3192_s2 = inlined_call_operand.vmem [shape: f32[32,32], index: 2, kind: input, shape index: {}]   ;;  %s3193_s3 = inlined_call_operand.vmem [shape: f32[1,32], index: 3, kind: input, shape index: {}]   ;;  %s3194_s4 = inlined_call_operand.vmem [shape: f32[48,32], index: 4, kind: input, shape index: {}]   ;;  %s3195_s5 = inlined_call_operand.vmem [shape: f32[1,32], index: 5, kind: input, shape index: {}]   ;;  %s3196_s6 = inlined_call_operand.vmem [shape: f32[48,32], index: 6, kind: input, shape index: {}]   ;;  %s3197_s7 = inlined_call_operand.vmem [shape: f32[1,32], index: 7, kind: input, shape index: {}]   ;;  %s3198_s8 = inlined_call_operand.vmem [shape: f32[32,32], index: 8, kind: input, shape index: {}]   ;;  %s3199_s9 = inlined_call_operand.vmem [shape: f32[1,32], index: 9, kind: input, shape index: {}]   ;;  %s3200_s10 = inlined_call_operand.hbm [shape: f32[2,8,32], index: 10, kind: output, shape index: {}]  }
   0x1   :  { %v51_v0 = vld [vmem:[%s3194_s4 + $0x28] sm:$0xff]  ;;  %v50_v1 = vld [vmem:[%s3194_s4 + $0x20] sm:$0xff]  ;;  %v45_v2 = vld [vmem:[%s3192_s2 + $0x18] sm:$0xff] }
   0x2   :  { %2485 = vmatprep.subr.mxu1 %v51_v0  ;;  %v44_v3 = vld [vmem:[%s3192_s2 + $0x10] sm:$0xff]  ;;  %v49_v4 = vld [vmem:[%s3194_s4 + $0x18] sm:$0xff]  ;;  %2474 = vmatprep.subr.mxu0 %v45_v2  ;;  %v43_v5 = vld [vmem:[%s3192_s2 + $0x8] sm:$0xff] }
   0x3   :  { %2486 = vmatpush3.msra.mxu1 %v51_v0  ;;  %2475 = vmatpush3.msra.mxu0 %v45_v2  ;;  %v48_v6 = vld [vmem:[%s3194_s4 + $0x10] sm:$0xff] }
   0x4   :  { %2487 = vmatprep.subr.mxu1 %v50_v1  ;;  %2476 = vmatprep.subr.mxu0 %v44_v3 }
   0x5   :  { %2488 = vmatpush3.msra.mxu1 %v50_v1 }
   0x6   :  { %15 = vsyncpa [#allocation3], 0  ;;  %2489 = vmatprep.subr.mxu1 %v49_v4  ;;  %2477 = vmatpush3.msra.mxu0 %v44_v3  ;;  %v38_v7 = vld [vmem:[%s3191_s1] sm:$0xff]  ;;  %vm160_vm0 = vcmask 392192   ;;  %v47_v8 = vld [vmem:[%s3194_s4 + $0x8] sm:$0xff]  ;;  %vm72_vm1 = vcmask 261120  }
   0x7   :  { %2490 = vmatpush3.msra.mxu1 %v49_v4  ;;  %2478 = vmatprep.subr.mxu0 %v43_v5  ;;  %v42_v9 = vld [vmem:[%s3192_s2] sm:$0xff]  ;;  %v37_v12 = vld [vmem:[%s3190_s0 + $0x8] sm:$0xff]  ;;  %v2735_v14 = vmov 0.0   ;;  %v40_v15 = vld [vmem:[%s3191_s1 + $0x10] sm:$0xff]  ;;  %vm2736_vm2 = vmmov 0   ;;  %vm351_vm3 = vcmask 64512  }
   0x8   :  { %2491 = vmatprep.subr.mxu1 %v48_v6  ;;  %2479 = vmatpush3.msra.mxu0 %v43_v5  ;;  %v46_v10 = vld [vmem:[%s3194_s4] sm:$0xff]  ;;  %v39_v13 = vld [vmem:[%s3191_s1 + $0x8] sm:$0xff]  ;;  %v41_v16 = vld [vmem:[%s3191_s1 + $0x18] sm:$0xff]  ;;  %s2737_s16 = smov 120   ;;  %vm431_vm4 = vcmask 130048   ;;  %s2739_s17 = smov 104  }
   0x9   :  { %2492 = vmatpush3.msra.mxu1 %v48_v6  ;;  %2497 = vmatprep.mubr.msk.f32.mxu1 %vm160_vm0, %v38_v7  ;;  %v36_v11 = vld [vmem:[%s3190_s0] sm:$0xff]  ;;  %v57_v17 = vld [vmem:[%s3196_s6 + $0x28] sm:$0xff]  ;;  %v55_v19 = vld [vmem:[%s3196_s6 + $0x18] sm:$0xff] }
   0xa   :  { %2493 = vmatprep.subr.mxu1 %v47_v8  ;;  %2480 = vmatprep.subr.mxu0 %v42_v9  ;;  %v56_v18 = vld [vmem:[%s3196_s6 + $0x20] sm:$0xff]  ;;  %v54_v20 = vld [vmem:[%s3196_s6 + $0x10] sm:$0xff]  ;;  %v53_v21 = vld [vmem:[%s3196_s6 + $0x8] sm:$0xff] }
   0xb   :  { %2494 = vmatpush3.msra.mxu1 %v47_v8  ;;  %2481 = vmatpush3.msra.mxu0 %v42_v9  ;;  %v52_v22 = vld [vmem:[%s3196_s6] sm:$0xff]  ;;  %v2972_v3 = vld [vmem:[%s3198_s8 + $0x8] sm:$0xff] }
   0xc   :  { %2495 = vmatprep.subr.mxu1 %v46_v10  ;;  %2482 = vmatprep.mubr.msk.f32.mxu0 %vm72_vm1, %v36_v11  ;;  %v2330_v23 = vld [vmem:[%s3193_s3] ss:$0 sm:$0xff] }
   0xd   :  { %2496 = vmatpush3.msra.mxu1 %v46_v10  ;;  %2483 = vmatmul.mubr.msk.f32.vlgmr.msra.gmra.mxu0 %vm72_vm1, %v37_v12  ;;  %v2886_v24 = vld [vmem:[%s3195_s5] ss:$0 sm:$0xff] }
   0xe   :  { %2498 = vmatmul.mubr.msk.f32.vlgmr.msra.gmra.mxu1 %vm160_vm0, %v39_v13  ;;  %2515 = vmatprep.mubr.msk.f32.mxu0 %vm160_vm0, %v38_v7  ;;  %v2917_v34 = vld [vmem:[%s3197_s7] ss:$0 sm:$0xff]  ;;  %s2738_s7 = smov 112  }
   0xf   :  { %2521 = vmatprep.subr.mxu1 %v2735_v14  ;;  %2500 = vmatprep.mubr.msk.f32.mxu1 %vm160_vm0, %v40_v15  ;;  %v2980_v8 = vld [vmem:[%s3198_s8] sm:$0xff] }
  0x10   :  { %2503 = vmatprep.subr.mxu0 %v57_v17 }
  0x11   :  { %2504 = vmatpush3.msra.mxu0 %v57_v17 }
  0x12   :  { %2501 = vmatmul.mubr.msk.f32.gmra.mxu1 %vm160_vm0, %v41_v16  ;;  %2505 = vmatprep.subr.mxu0 %v56_v18 }
  0x13   :  { %2525 = vmatprep.mubr.msk.f32.mxu1 %vm2736_vm2, %v2735_v14  ;;  %2506 = vmatpush3.msra.mxu0 %v56_v18 }
  0x14   :  { %2507 = vmatprep.subr.mxu0 %v55_v19 }
  0x15   :  { %2508 = vmatpush3.msra.mxu0 %v55_v19 }
  0x16   :  { %2509 = vmatprep.subr.mxu0 %v54_v20 }
  0x17   :  { %2510 = vmatpush3.msra.mxu0 %v54_v20 }
  0x18   :  { %2511 = vmatprep.subr.mxu0 %v53_v21 }
  0x19   :  { %2512 = vmatpush3.msra.mxu0 %v53_v21 }
  0x1a   :  { %2513 = vmatprep.subr.mxu0 %v52_v22 }
  0x1b   :  { %2514 = vmatpush3.msra.mxu0 %v52_v22 }
  0x1c   :  { %2516 = vmatmul.mubr.msk.f32.vlgmr.msra.gmra.mxu0 %vm160_vm0, %v39_v13  ;;  %2535 = vmatprep.subr.mxu0 %v2735_v14 }
  0x1d   :  { %2518 = vmatprep.mubr.msk.f32.mxu0 %vm160_vm0, %v40_v15 }
  0x20   :  { %2519 = vmatmul.mubr.msk.f32.gmra.mxu0 %vm160_vm0, %v41_v16 }
  0x21   :  { %2539 = vmatprep.mubr.msk.f32.mxu0 %vm2736_vm2, %v2735_v14 }
  0xcd   :  { %v2484_v25 = vpop.f32.mrf.mxu0 }
  0xce   :  { %v2499_v26 = vpop.f32.mrf.mxu1  ;;  %v2888_v27 = vadd.f32 %v2484_v25, %v2330_v23 }
  0xcf   :  { %v2891_v28 = vadd.f32 %v2499_v26, %v2886_v24  ;;  %v145_v29 = vpop.f32.mrf.mxu0 }
  0xd0   :  { %v239_v30 = vpop.f32.mrf.mxu1  ;;  %v146_v31 = vadd.f32 %v2330_v23, %v145_v29  ;;  %v3021_v22 = vmul.f32 0.35355338, %v2888_v27 }
  0xd1   :  { %520 = vrot.lane.b32.xlu0 %v2891_v28, %s2737_s16  ;;  %2522 = vmatpush3.xpose.msk.msra.mxu1 %vm351_vm3, %v2891_v28  ;;  %v2901_v33 = vadd.f32 %v2886_v24, %v239_v30 }
  0xd2   :  { %v2897_v32 = vmul.f32 0.35355338, %v146_v31  ;;  %2523 = vmatprep.subr.mxu1 %v2735_v14  ;;  %v2939_v44 = vpop.f32.mrf.mxu1 }
  0xd3   :  { %v3006_v19 = vadd.f32 %v2939_v44, %v2886_v24 }
  0xd4   :  { %516 = vrot.lane.b32.xlu1 %v2897_v32, %s2737_s16  ;;  %v2941_v45 = vpop.f32.mrf.mxu1 }
  0xd5   :  { %518 = vrot.lane.b32.xlu0 %v2901_v33, %s2737_s16  ;;  %2524 = vmatpush3.xpose.msk.msra.mxu1 %vm351_vm3, %v2901_v33  ;;  %v3016_v21 = vadd.f32 %v2886_v24, %v2941_v45 }
  0xd6   :  { %2528 = vmatprep.subr.mxu1 %v2735_v14 }
  0xd8   :  { %2526 = vmatmul.mubr.msk.f32.vlgmr.msra.gmra.mxu1 %vm351_vm3, %v2897_v32 }
  0xd9   :  { %2532 = vmatprep.mubr.msk.f32.mxu1 %vm2736_vm2, %v2735_v14 }
  0xdc   :  { %v2517_v35 = vpop.f32.mrf.mxu0 }
  0xdd   :  { %v2920_v36 = vadd.f32 %v2517_v35, %v2917_v34 }
  0xde   :  { %v330_v37 = vpop.f32.mrf.mxu0 }
  0xdf   :  { %v2923_v38 = vadd.f32 %v2917_v34, %v330_v37  ;;  %2529 = vmatpush3.msra.mxu1 %v2920_v36 }
  0xe0   :  { %v2520_v39 = vpop.f32.mrf.mxu0  ;;  %2530 = vmatprep.subr.mxu1 %v2735_v14 }
  0xe1   :  { %v2928_v40 = vadd.f32 %v2520_v39, %v2917_v34  ;;  %2531 = vmatpush3.msra.mxu1 %v2923_v38 }
  0xe2   :  { %2542 = vmatprep.subr.mxu1 %v2735_v14  ;;  %v2944_v49 = vpop.f32.mrf.mxu0 }
 0x143   :  { %v521_v41 = vpop.permute.xlu0 %520 }
 0x144   :  { %2536 = vmatpush3.xpose.msk.msra.mxu0 %vm351_vm3, %v521_v41 }
 0x145   :  { %2537 = vmatprep.subr.mxu0 %v2735_v14 }
 0x146   :  { %v517_v43 = vpop.permute.xlu1 %516 }
 0x147   :  { %v519_v42 = vpop.permute.xlu0 %518 }
 0x148   :  { %2538 = vmatpush3.xpose.msk.msra.mxu0 %vm351_vm3, %v519_v42 }
 0x149   :  { %2549 = vmatprep.subr.mxu0 %v2735_v14 }
 0x14b   :  { %2540 = vmatmul.mubr.msk.f32.vlgmr.msra.gmra.mxu0 %vm351_vm3, %v517_v43 }
 0x14c   :  { %2551 = vmatprep.mubr.msk.f32.mxu0 %vm2736_vm2, %v2735_v14  ;;  %2550 = vmatpush3.msra.mxu0 %v2972_v3 }
 0x14d   :  { %2559 = vmatprep.subr.mxu0 %v2735_v14 }
 0x198   :  { %v427_v46 = vpop.f32.mrf.mxu1 }
 0x199   :  { %v432_v47 = vsel %vm431_vm4, %v427_v46, -inf }
 0x19a   :  { %433 = vmax.xlane.f32.xlu1 %v432_v47  ;;  %v2527_v48 = vpop.f32.mrf.mxu1 }
 0x20b   :  { %v594_v50 = vpop.f32.mrf.mxu0 }
 0x20c   :  { %v598_v51 = vsel %vm431_vm4, %v594_v50, -inf }
 0x20d   :  { %599 = vmax.xlane.f32.xlu0 %v598_v51  ;;  %v2541_v52 = vpop.f32.mrf.mxu0 }
 0x223   :  { %v434_v53 = vpop.xlane.xlu1 %433 }
 0x224   :  { %v435_v54 = vsub.f32 %v427_v46, %v434_v53 }
 0x226   :  { %v436_v55 = vmul.f32 1.442695, %v435_v54 }
 0x228   :  { %2681 = vpow2.f32 %v436_v55 }
 0x235   :  { %v2682_v56 = vpop.eup %2681 }
 0x236   :  { %v438_v57 = vsel %vm431_vm4, %v2682_v56, 0.0 }
 0x237   :  { %439 = vadd.xlane.f32.xlu0 %v438_v57 }
 0x24d   :  { %613 = vrot.lane.b32.xlu0 %v2920_v36, %s2737_s16 }
 0x251   :  { %838 = vrot.lane.b32.xlu0 %v2901_v33, %s2738_s7 }
 0x255   :  { %1086 = vrot.lane.b32.xlu0 %v2891_v28, %s2739_s17 }
 0x259   :  { %1082 = vrot.lane.b32.xlu0 %v2897_v32, %s2739_s17 }
 0x296   :  { %v600_v58 = vpop.xlane.xlu0 %599 }
 0x297   :  { %v601_v59 = vsub.f32 %v594_v50, %v600_v58 }
 0x299   :  { %v602_v60 = vmul.f32 1.442695, %v601_v59 }
 0x29b   :  { %2683 = vpow2.f32 %v602_v60  ;;  %v3057_v60 = vld [vmem:[%s3198_s8 + $0x10] sm:$0xff] }
 0x2a8   :  { %v2684_v61 = vpop.eup %2683 }
 0x2a9   :  { %v604_v62 = vsel %vm431_vm4, %v2684_v61, 0.0 }
 0x2aa   :  { %605 = vadd.xlane.f32.xlu1 %v604_v62 }
 0x2bb   :  { %611 = vrot.lane.b32.xlu1 %v2923_v38, %s2737_s16 }
 0x2bf   :  { %840 = vrot.lane.b32.xlu1 %v2891_v28, %s2738_s7 }
 0x2c0   :  { %v440_v63 = vpop.xlane.xlu0 %439 }
 0x2c1   :  { %2685 = vrcp.f32 %v440_v63 }
 0x2c3   :  { %836 = vrot.lane.b32.xlu1 %v2897_v32, %s2738_s7 }
 0x2c4   :  { %v614_v2 = vpop.permute.xlu0 %613 }
 0x2c7   :  { %1084 = vrot.lane.b32.xlu1 %v2901_v33, %s2739_s17 }
 0x2c8   :  { %v839_v15 = vpop.permute.xlu0 %838 }
 0x2cc   :  { %v1087_v17 = vpop.permute.xlu0 %1086 }
 0x2ce   :  { %v2686_v0 = vpop.eup %2685 }
 0x2cf   :  { %v442_v1 = vmul.f32 %v2686_v0, %v2682_v56 }
 0x2d0   :  { %v1083_v20 = vpop.permute.xlu0 %1082 }
 0x2d1   :  { %2533 = vmatmul.mubr.msk.f32.vlgmr.msra.gmra.mxu1 %vm431_vm4, %v442_v1 }
 0x2d2   :  { %2543 = vmatpush3.msra.mxu1 %v614_v2  ;;  %2546 = vmatprep.mubr.msk.f32.mxu1 %vm2736_vm2, %v2735_v14 }
 0x2d3   :  { %2544 = vmatprep.subr.mxu1 %v2735_v14 }
 0x333   :  { %v606_v4 = vpop.xlane.xlu1 %605 }
 0x334   :  { %2687 = vrcp.f32 %v606_v4  ;;  %v3075_v4 = vld [vmem:[%s3198_s8 + $0x18] sm:$0xff] }
 0x337   :  { %v612_v5 = vpop.permute.xlu1 %611 }
 0x338   :  { %2545 = vmatpush3.msra.mxu1 %v612_v5 }
 0x339   :  { %2554 = vmatprep.subr.mxu1 %v2735_v14 }
 0x33b   :  { %v841_v12 = vpop.permute.xlu1 %840 }
 0x33f   :  { %v837_v16 = vpop.permute.xlu1 %836 }
 0x341   :  { %v2688_v6 = vpop.eup %2687 }
 0x342   :  { %v608_v7 = vmul.f32 %v2688_v6, %v2684_v61 }
 0x343   :  { %v1085_v18 = vpop.permute.xlu1 %1084 }
 0x344   :  { %2547 = vmatmul.mubr.msk.f32.vlgmr.msra.gmra.mxu1 %vm431_vm4, %v608_v7 }
 0x345   :  { %2555 = vmatpush3.msra.mxu1 %v2980_v8  ;;  %2556 = vmatprep.mubr.msk.f32.mxu1 %vm2736_vm2, %v2735_v14 }
 0x346   :  { %2566 = vmatprep.subr.mxu1 %v2735_v14 }
 0x391   :  { %v512_v9 = vpop.f32.mrf.mxu1 }
 0x392   :  { %2557 = vmatmul.mubr.msk.f32.vlgmr.msra.gmra.mxu1 %vm351_vm3, %v512_v9 }
 0x393   :  { %v2534_v10 = vpop.f32.mrf.mxu1  ;;  %2570 = vmatprep.mubr.msk.f32.mxu1 %vm2736_vm2, %v2735_v14 }
 0x404   :  { %v686_v11 = vpop.f32.mrf.mxu1 }
 0x405   :  { %2552 = vmatmul.mubr.msk.f32.vlgmr.msra.gmra.mxu0 %vm351_vm3, %v686_v11 }
 0x406   :  { %2560 = vmatpush3.xpose.msk.msra.mxu0 %vm351_vm3, %v841_v12  ;;  %v2548_v13 = vpop.f32.mrf.mxu1  ;;  %2563 = vmatprep.mubr.msk.f32.mxu0 %vm2736_vm2, %v2735_v14 }
 0x407   :  { %2561 = vmatprep.subr.mxu0 %v2735_v14  ;;  %v3084_v13 = vadd.f32 %v2917_v34, %v2944_v49  ;;  %v3107_v49 = vld [vmem:[%s3199_s9] ss:$0 sm:$0xff]  ;;  %s2740_s9 = smov [#allocation2]  }
 0x408   :  { %s2319_s24 = sshll.u32 %s2740_s9, 4  ;;  %s2320_s24 = int_to_ptr.vmem [resolvable:$true] %s2319_s24 }
 0x409   :  { %s2713_s25 = scalar_lea.vmem %s2320_s24, 256  ;;  %p2718_p1 = scmp.lt.s32.totalorder %s2320_s24, %s2320_s24 }
 0x40a   :  { %2562 = vmatpush3.xpose.msk.msra.mxu0 %vm351_vm3, %v839_v15  ;;  %p2714_p0 = scmp.ne.s32.totalorder %s2320_s24, %s2713_s25  ;;  %p2719_p2 = scmp.lt.s32.totalorder %s2713_s25, %s2713_s25 }
 0x40b   :  { %2578 = vmatprep.subr.mxu0 %v2735_v14 }
 0x40c   :  { %p2720_p3 = por %p2719_p2, %p2718_p1 }
 0x40d   :  { %2564 = vmatmul.mubr.msk.f32.vlgmr.msra.gmra.mxu0 %vm351_vm3, %v837_v16 }
 0x40e   :  { %2579 = vmatpush3.xpose.msk.msra.mxu0 %vm351_vm3, %v1087_v17  ;;  %2582 = vmatprep.mubr.msk.f32.mxu0 %vm2736_vm2, %v2735_v14  ;;  %p2721_p4 = pnand %p2720_p3, %p2714_p0 }
 0x40f   :  { %2580 = vmatprep.subr.mxu0 %v2735_v14 }
 0x412   :  { %2581 = vmatpush3.xpose.msk.msra.mxu0 %vm351_vm3, %v1085_v18 }
 0x413   :  { %2597 = vmatprep.subr.mxu0 %v2735_v14 }
 0x415   :  { %2583 = vmatmul.mubr.msk.f32.vlgmr.msra.gmra.mxu0 %vm351_vm3, %v1083_v20 }
 0x416   :  { %2598 = vmatpush3.xpose.msk.msra.mxu0 %vm351_vm3, %v3006_v19  ;;  %2601 = vmatprep.mubr.msk.f32.mxu0 %vm2736_vm2, %v2735_v14 }
 0x417   :  { %2599 = vmatprep.subr.mxu0 %v2735_v14 }
 0x41a   :  { %2600 = vmatpush3.xpose.msk.msra.mxu0 %vm351_vm3, %v3016_v21 }
 0x41b   :  { %2618 = vmatprep.subr.mxu0 %v2735_v14 }
 0x41d   :  { %2602 = vmatmul.mubr.msk.f32.vlgmr.msra.gmra.mxu0 %vm351_vm3, %v3021_v22 }
 0x41e   :  { %2622 = vmatprep.mubr.msk.f32.mxu0 %vm2736_vm2, %v2735_v14 }
 0x452   :  { %v3028_v23 = vpop.f32.mrf.mxu1 }
 0x454   :  { %v2558_v25 = vpop.f32.mrf.mxu1 }
 0x4c5   :  { %v3030_v26 = vpop.f32.mrf.mxu0 }
 0x4c6   :  { %v833_v6 = vadd.f32 %v3028_v23, %v3030_v26 }
 0x4c7   :  { %v2553_v24 = vpop.f32.mrf.mxu0 }
 0x4cd   :  { %v914_v28 = vpop.f32.mrf.mxu0 }
 0x4ce   :  { %v918_v29 = vsel %vm431_vm4, %v914_v28, -inf }
 0x4cf   :  { %919 = vmax.xlane.f32.xlu1 %v918_v29  ;;  %v2565_v27 = vpop.f32.mrf.mxu0 }
 0x4d5   :  { %v1160_v30 = vpop.f32.mrf.mxu0 }
 0x4d6   :  { %v1164_v35 = vsel %vm431_vm4, %v1160_v30, -inf }
 0x4d7   :  { %v2584_v31 = vpop.f32.mrf.mxu0 }
 0x4dd   :  { %v1411_v32 = vpop.f32.mrf.mxu0 }
 0x4de   :  { %v1415_v37 = vsel %vm431_vm4, %v1411_v32, -inf }
 0x4df   :  { %v2603_v33 = vpop.f32.mrf.mxu0 }
 0x4e0   :  { %929 = vrot.lane.b32.xlu1 %v2923_v38, %s2738_s7 }
 0x504   :  { %1165 = vmax.xlane.f32.xlu1 %v1164_v35 }
 0x515   :  { %1175 = vrot.lane.b32.xlu1 %v2923_v38, %s2739_s17 }
 0x539   :  { %1416 = vmax.xlane.f32.xlu1 %v1415_v37 }
 0x54a   :  { %1501 = vrot.lane.b32.xlu1 %v3016_v21, %s2737_s16 }
 0x54e   :  { %1499 = vrot.lane.b32.xlu1 %v3021_v22, %s2737_s16 }
 0x558   :  { %v920_v39 = vpop.xlane.xlu1 %919 }
 0x559   :  { %v921_v41 = vsub.f32 %v914_v28, %v920_v39 }
 0x55b   :  { %v922_v42 = vmul.f32 1.442695, %v921_v41 }
 0x55c   :  { %v930_v38 = vpop.permute.xlu1 %929 }
 0x55d   :  { %2689 = vpow2.f32 %v922_v42 }
 0x56a   :  { %v2690_v43 = vpop.eup %2689 }
 0x56b   :  { %v924_v44 = vsel %vm431_vm4, %v2690_v43, 0.0 }
 0x56c   :  { %925 = vadd.xlane.f32.xlu0 %v924_v44 }
 0x582   :  { %931 = vrot.lane.b32.xlu0 %v2920_v36, %s2738_s7 }
 0x58d   :  { %v1166_v45 = vpop.xlane.xlu1 %1165 }
 0x58e   :  { %v1167_v46 = vsub.f32 %v1160_v30, %v1166_v45 }
 0x590   :  { %v1168_v47 = vmul.f32 1.442695, %v1167_v46 }
 0x591   :  { %v1176_v51 = vpop.permute.xlu1 %1175 }
 0x592   :  { %2691 = vpow2.f32 %v1168_v47 }
 0x59f   :  { %v2692_v48 = vpop.eup %2691 }
 0x5a0   :  { %v1170_v50 = vsel %vm431_vm4, %v2692_v48, 0.0 }
 0x5a1   :  { %1171 = vadd.xlane.f32.xlu0 %v1170_v50 }
 0x5b7   :  { %1177 = vrot.lane.b32.xlu0 %v2920_v36, %s2739_s17 }
 0x5c2   :  { %v1417_v52 = vpop.xlane.xlu1 %1416 }
 0x5c3   :  { %v1418_v53 = vsub.f32 %v1411_v32, %v1417_v52 }
 0x5c5   :  { %v1419_v54 = vmul.f32 1.442695, %v1418_v53 }
 0x5c6   :  { %v1502_v18 = vpop.permute.xlu1 %1501 }
 0x5c7   :  { %2693 = vpow2.f32 %v1419_v54 }
 0x5ca   :  { %v1500_v34 = vpop.permute.xlu1 %1499 }
 0x5d4   :  { %v2694_v55 = vpop.eup %2693 }
 0x5d5   :  { %v1421_v56 = vsel %vm431_vm4, %v2694_v55, 0.0 }
 0x5d6   :  { %1422 = vadd.xlane.f32.xlu0 %v1421_v56 }
 0x5ec   :  { %1503 = vrot.lane.b32.xlu0 %v3006_v19, %s2737_s16 }
 0x5f5   :  { %v926_v57 = vpop.xlane.xlu0 %925 }
 0x5f6   :  { %2695 = vrcp.f32 %v926_v57 }
 0x5f9   :  { %v932_v58 = vpop.permute.xlu0 %931 }
 0x5fa   :  { %2567 = vmatpush3.msra.mxu1 %v932_v58 }
 0x5fb   :  { %2568 = vmatprep.subr.mxu1 %v2735_v14 }
 0x5fc   :  { %2569 = vmatpush3.msra.mxu1 %v930_v38 }
 0x5fd   :  { %2573 = vmatprep.subr.mxu1 %v2735_v14 }
 0x603   :  { %v2696_v36 = vpop.eup %2695 }
 0x604   :  { %v928_v59 = vmul.f32 %v2696_v36, %v2690_v43 }
 0x606   :  { %2571 = vmatmul.mubr.msk.f32.vlgmr.msra.gmra.mxu1 %vm431_vm4, %v928_v59 }
 0x607   :  { %2574 = vmatpush3.msra.mxu1 %v3057_v60  ;;  %2575 = vmatprep.mubr.msk.f32.mxu1 %vm2736_vm2, %v2735_v14 }
 0x608   :  { %2585 = vmatprep.subr.mxu1 %v2735_v14 }
 0x62a   :  { %v1172_v61 = vpop.xlane.xlu0 %1171 }
 0x62b   :  { %2697 = vrcp.f32 %v1172_v61 }
 0x62e   :  { %v1178_v0 = vpop.permute.xlu0 %1177 }
 0x638   :  { %v2698_v62 = vpop.eup %2697 }
 0x639   :  { %v1174_v2 = vmul.f32 %v2698_v62, %v2692_v48 }
 0x65f   :  { %v1423_v5 = vpop.xlane.xlu0 %1422 }
 0x660   :  { %2699 = vrcp.f32 %v1423_v5 }
 0x663   :  { %v1504_v17 = vpop.permute.xlu0 %1503 }
 0x66d   :  { %v2700_v11 = vpop.eup %2699 }
 0x66e   :  { %v1425_v16 = vmul.f32 %v2700_v11, %v2694_v55 }
 0x6c6   :  { %v1004_v63 = vpop.f32.mrf.mxu1 }
 0x6c7   :  { %2576 = vmatmul.mubr.msk.f32.vlgmr.msra.gmra.mxu1 %vm351_vm3, %v1004_v63 }
 0x6c8   :  { %2586 = vmatpush3.msra.mxu1 %v1178_v0  ;;  %v2572_v1 = vpop.f32.mrf.mxu1  ;;  %2589 = vmatprep.mubr.msk.f32.mxu1 %vm2736_vm2, %v2735_v14 }
 0x6c9   :  { %2587 = vmatprep.subr.mxu1 %v2735_v14 }
 0x6ca   :  { %2588 = vmatpush3.msra.mxu1 %v1176_v51 }
 0x6cb   :  { %2590 = vmatmul.mubr.msk.f32.vlgmr.msra.gmra.mxu1 %vm431_vm4, %v1174_v2  ;;  %2592 = vmatprep.subr.mxu1 %v2735_v14 }
 0x6cc   :  { %2594 = vmatprep.mubr.msk.f32.mxu1 %vm2736_vm2, %v2735_v14  ;;  %2593 = vmatpush3.msra.mxu1 %v3075_v4 }
 0x6cd   :  { %2604 = vmatprep.subr.mxu1 %v2735_v14 }
 0x787   :  { %v1077_v7 = vpop.f32.mrf.mxu1 }
 0x788   :  { %v1081_v9 = vadd.f32 %v1077_v7, %v833_v6 }
 0x789   :  { %v2577_v10 = vpop.f32.mrf.mxu1 }
 0x78b   :  { %v1250_v12 = vpop.f32.mrf.mxu1 }
 0x78c   :  { %2595 = vmatmul.mubr.msk.f32.vlgmr.msra.gmra.mxu1 %vm351_vm3, %v1250_v12 }
 0x78d   :  { %2605 = vmatpush3.msra.mxu1 %v2928_v40  ;;  %v2591_v15 = vpop.f32.mrf.mxu1  ;;  %2608 = vmatprep.mubr.msk.f32.mxu1 %vm2736_vm2, %v2735_v14 }
 0x78e   :  { %2606 = vmatprep.subr.mxu1 %v2735_v14 }
 0x78f   :  { %2607 = vmatpush3.msra.mxu1 %v3084_v13 }
 0x790   :  { %2611 = vmatprep.subr.mxu1 %v2735_v14  ;;  %2609 = vmatmul.mubr.msk.f32.vlgmr.msra.gmra.mxu1 %vm431_vm4, %v1425_v16 }
 0x791   :  { %2612 = vmatpush3.xpose.msk.msra.mxu1 %vm351_vm3, %v1504_v17  ;;  %2615 = vmatprep.mubr.msk.f32.mxu1 %vm2736_vm2, %v2735_v14 }
 0x792   :  { %2613 = vmatprep.subr.mxu1 %v2735_v14 }
 0x795   :  { %2614 = vmatpush3.xpose.msk.msra.mxu1 %vm351_vm3, %v1502_v18 }
 0x796   :  { %2630 = vmatprep.subr.mxu1 %v2735_v14 }
 0x798   :  { %2616 = vmatmul.mubr.msk.f32.vlgmr.msra.gmra.mxu1 %vm351_vm3, %v1500_v34 }
 0x799   :  { %2631 = vmatpush3.msra.mxu1 %v2980_v8  ;;  %2632 = vmatprep.mubr.msk.f32.mxu1 %vm2736_vm2, %v2735_v14 }
 0x79a   :  { %2642 = vmatprep.subr.mxu1 %v2735_v14 }
 0x84c   :  { %v1323_v20 = vpop.f32.mrf.mxu1 }
 0x84d   :  { %v1327_v23 = vadd.f32 %v1323_v20, %v1081_v9 }
 0x84e   :  { %v2596_v25 = vpop.f32.mrf.mxu1 }
 0x84f   :  { %v1334_v26 = vadd.f32 %v3107_v49, %v1327_v23 }
 0x850   :  { %v1495_v24 = vpop.f32.mrf.mxu1 }
 0x851   :  { %1335 = vst.msk [vmem:[#allocation2] sm:$0xff] %vm72_vm1, %v1334_v26  ;;  %2633 = vmatmul.mubr.msk.f32.vlgmr.msra.gmra.mxu1 %vm351_vm3, %v1495_v24 }
 0x852   :  { %v2610_v8 = vpop.f32.mrf.mxu1  ;;  %2646 = vmatprep.mubr.msk.f32.mxu1 %vm2736_vm2, %v2735_v14 }
 0x858   :  { %v1577_v28 = vpop.f32.mrf.mxu1 }
 0x859   :  { %v1581_v29 = vsel %vm431_vm4, %v1577_v28, -inf }
 0x85a   :  { %1582 = vmax.xlane.f32.xlu0 %v1581_v29  ;;  %v2617_v27 = vpop.f32.mrf.mxu1 }
 0x870   :  { %1596 = vrot.lane.b32.xlu0 %v2928_v40, %s2737_s16 }
 0x874   :  { %1823 = vrot.lane.b32.xlu0 %v3006_v19, %s2738_s7 }
 0x878   :  { %1819 = vrot.lane.b32.xlu0 %v3021_v22, %s2738_s7 }
 0x87c   :  { %2067 = vrot.lane.b32.xlu0 %v3016_v21, %s2739_s17 }
 0x8e3   :  { %v1583_v30 = vpop.xlane.xlu0 %1582 }
 0x8e4   :  { %v1584_v31 = vsub.f32 %v1577_v28, %v1583_v30 }
 0x8e6   :  { %v1585_v32 = vmul.f32 1.442695, %v1584_v31 }
 0x8e7   :  { %v1597_v33 = vpop.permute.xlu0 %1596 }
 0x8e8   :  { %2701 = vpow2.f32 %v1585_v32  ;;  %2619 = vmatpush3.msra.mxu0 %v1597_v33 }
 0x8e9   :  { %2620 = vmatprep.subr.mxu0 %v2735_v14 }
 0x8f5   :  { %v2702_v35 = vpop.eup %2701 }
 0x8f6   :  { %v1587_v37 = vsel %vm431_vm4, %v2702_v35, 0.0 }
 0x8f7   :  { %1588 = vadd.xlane.f32.xlu1 %v1587_v37 }
 0x908   :  { %1594 = vrot.lane.b32.xlu1 %v3084_v13, %s2737_s16 }
 0x90c   :  { %1821 = vrot.lane.b32.xlu1 %v3016_v21, %s2738_s7  ;;  %v1824_v21 = vpop.permute.xlu0 %1823 }
 0x910   :  { %2069 = vrot.lane.b32.xlu1 %v3006_v19, %s2739_s17 }
 0x911   :  { %v3131_v39 = vpop.f32.mrf.mxu1 }
 0x913   :  { %v2634_v41 = vpop.f32.mrf.mxu1 }
 0x914   :  { %2065 = vrot.lane.b32.xlu1 %v3021_v22, %s2739_s17 }
 0x980   :  { %v1589_v42 = vpop.xlane.xlu1 %1588 }
 0x981   :  { %2703 = vrcp.f32 %v1589_v42 }
 0x984   :  { %v1595_v43 = vpop.permute.xlu1 %1594 }
 0x985   :  { %2621 = vmatpush3.msra.mxu0 %v1595_v43 }
 0x986   :  { %2625 = vmatprep.subr.mxu0 %v2735_v14 }
 0x988   :  { %v1822_v45 = vpop.permute.xlu1 %1821 }
 0x98c   :  { %v2070_v46 = vpop.permute.xlu1 %2069 }
 0x98e   :  { %v2704_v44 = vpop.eup %2703 }
 0x98f   :  { %v1591_v38 = vmul.f32 %v2704_v44, %v2702_v35 }
 0x990   :  { %v2066_v48 = vpop.permute.xlu1 %2065 }
 0x991   :  { %2623 = vmatmul.mubr.msk.f32.vlgmr.msra.gmra.mxu0 %vm431_vm4, %v1591_v38 }
 0x992   :  { %2626 = vmatpush3.msra.mxu0 %v2972_v3  ;;  %2627 = vmatprep.mubr.msk.f32.mxu0 %vm2736_vm2, %v2735_v14  ;;  %v1820_v3 = vpop.permute.xlu0 %1819 }
 0x993   :  { %2635 = vmatprep.subr.mxu0 %v2735_v14 }
 0x996   :  { %v2068_v47 = vpop.permute.xlu0 %2067 }
 0xa51   :  { %v1669_v19 = vpop.f32.mrf.mxu0 }
 0xa52   :  { %2628 = vmatmul.mubr.msk.f32.vlgmr.msra.gmra.mxu0 %vm351_vm3, %v1669_v19 }
 0xa53   :  { %2636 = vmatpush3.xpose.msk.msra.mxu0 %vm351_vm3, %v1824_v21  ;;  %v2624_v22 = vpop.f32.mrf.mxu0  ;;  %2639 = vmatprep.mubr.msk.f32.mxu0 %vm2736_vm2, %v2735_v14 }
 0xa54   :  { %2637 = vmatprep.subr.mxu0 %v2735_v14 }
 0xa57   :  { %2638 = vmatpush3.xpose.msk.msra.mxu0 %vm351_vm3, %v1822_v45 }
 0xa58   :  { %2654 = vmatprep.subr.mxu0 %v2735_v14 }
 0xa5a   :  { %2640 = vmatmul.mubr.msk.f32.vlgmr.msra.gmra.mxu0 %vm351_vm3, %v1820_v3 }
 0xa5b   :  { %2655 = vmatpush3.xpose.msk.msra.mxu0 %vm351_vm3, %v2070_v46  ;;  %2658 = vmatprep.mubr.msk.f32.mxu0 %vm2736_vm2, %v2735_v14 }
 0xa5c   :  { %2656 = vmatprep.subr.mxu0 %v2735_v14 }
 0xa5f   :  { %2657 = vmatpush3.xpose.msk.msra.mxu0 %vm351_vm3, %v2068_v47 }
 0xa62   :  { %2659 = vmatmul.mubr.msk.f32.vlgmr.msra.gmra.mxu0 %vm351_vm3, %v2066_v48 }
 0xb12   :  { %v1742_v50 = vpop.f32.mrf.mxu0 }
 0xb13   :  { %v1816_v18 = vadd.f32 %v3131_v39, %v1742_v50 }
 0xb14   :  { %v2629_v51 = vpop.f32.mrf.mxu0 }
 0xb1a   :  { %v1897_v52 = vpop.f32.mrf.mxu0 }
 0xb1b   :  { %v1901_v53 = vsel %vm431_vm4, %v1897_v52, -inf }
 0xb1c   :  { %1902 = vmax.xlane.f32.xlu0 %v1901_v53  ;;  %v2641_v54 = vpop.f32.mrf.mxu0 }
 0xb22   :  { %v2143_v55 = vpop.f32.mrf.mxu0 }
 0xb23   :  { %v2147_v57 = vsel %vm431_vm4, %v2143_v55, -inf }
 0xb24   :  { %v2660_v56 = vpop.f32.mrf.mxu0 }
 0xb32   :  { %1914 = vrot.lane.b32.xlu0 %v2928_v40, %s2738_s7 }
 0xb51   :  { %2148 = vmax.xlane.f32.xlu0 %v2147_v57 }
 0xb67   :  { %2160 = vrot.lane.b32.xlu0 %v2928_v40, %s2739_s17 }
 0xba5   :  { %v1903_v58 = vpop.xlane.xlu0 %1902 }
 0xba6   :  { %v1904_v36 = vsub.f32 %v1897_v52, %v1903_v58 }
 0xba8   :  { %v1905_v59 = vmul.f32 1.442695, %v1904_v36 }
 0xba9   :  { %v1915_v61 = vpop.permute.xlu0 %1914 }
 0xbaa   :  { %2705 = vpow2.f32 %v1905_v59  ;;  %2643 = vmatpush3.msra.mxu1 %v1915_v61 }
 0xbab   :  { %2644 = vmatprep.subr.mxu1 %v2735_v14 }
 0xbb7   :  { %v2706_v62 = vpop.eup %2705 }
 0xbb8   :  { %v1907_v63 = vsel %vm431_vm4, %v2706_v62, 0.0 }
 0xbb9   :  { %1908 = vadd.xlane.f32.xlu1 %v1907_v63 }
 0xbca   :  { %1912 = vrot.lane.b32.xlu1 %v3084_v13, %s2738_s7 }
 0xbda   :  { %v2149_v0 = vpop.xlane.xlu0 %2148 }
 0xbdb   :  { %v2150_v1 = vsub.f32 %v2143_v55, %v2149_v0 }
 0xbdd   :  { %v2151_v2 = vmul.f32 1.442695, %v2150_v1 }
 0xbde   :  { %v2161_v15 = vpop.permute.xlu0 %2160 }
 0xbdf   :  { %2707 = vpow2.f32 %v2151_v2 }
 0xbec   :  { %v2708_v40 = vpop.eup %2707 }
 0xbed   :  { %v2153_v5 = vsel %vm431_vm4, %v2708_v40, 0.0 }
 0xbee   :  { %2154 = vadd.xlane.f32.xlu1 %v2153_v5 }
 0xbff   :  { %2158 = vrot.lane.b32.xlu1 %v3084_v13, %s2739_s17 }
 0xc42   :  { %v1909_v6 = vpop.xlane.xlu1 %1908 }
 0xc43   :  { %2709 = vrcp.f32 %v1909_v6 }
 0xc46   :  { %v1913_v7 = vpop.permute.xlu1 %1912 }
 0xc47   :  { %2645 = vmatpush3.msra.mxu1 %v1913_v7 }
 0xc48   :  { %2649 = vmatprep.subr.mxu1 %v2735_v14 }
 0xc50   :  { %v2710_v9 = vpop.eup %2709 }
 0xc51   :  { %v1911_v10 = vmul.f32 %v2710_v9, %v2706_v62 }
 0xc53   :  { %2647 = vmatmul.mubr.msk.f32.vlgmr.msra.gmra.mxu1 %vm431_vm4, %v1911_v10 }
 0xc54   :  { %2650 = vmatpush3.msra.mxu1 %v3057_v60  ;;  %2651 = vmatprep.mubr.msk.f32.mxu1 %vm2736_vm2, %v2735_v14 }
 0xc55   :  { %2661 = vmatprep.subr.mxu1 %v2735_v14 }
 0xc77   :  { %v2155_v11 = vpop.xlane.xlu1 %2154 }
 0xc78   :  { %2711 = vrcp.f32 %v2155_v11 }
 0xc7b   :  { %v2159_v17 = vpop.permute.xlu1 %2158 }
 0xc85   :  { %v2712_v12 = vpop.eup %2711 }
 0xc86   :  { %v2157_v60 = vmul.f32 %v2712_v12, %v2708_v40 }
 0xd13   :  { %v1987_v13 = vpop.f32.mrf.mxu1 }
 0xd14   :  { %2652 = vmatmul.mubr.msk.f32.vlgmr.msra.gmra.mxu1 %vm351_vm3, %v1987_v13 }
 0xd15   :  { %2662 = vmatpush3.msra.mxu1 %v2161_v15  ;;  %v2648_v16 = vpop.f32.mrf.mxu1  ;;  %2665 = vmatprep.mubr.msk.f32.mxu1 %vm2736_vm2, %v2735_v14 }
 0xd16   :  { %2663 = vmatprep.subr.mxu1 %v2735_v14 }
 0xd17   :  { %2664 = vmatpush3.msra.mxu1 %v2159_v17 }
 0xd18   :  { %2666 = vmatmul.mubr.msk.f32.vlgmr.msra.gmra.mxu1 %vm431_vm4, %v2157_v60  ;;  %2668 = vmatprep.subr.mxu1 %v2735_v14 }
 0xd19   :  { %2669 = vmatpush3.msra.mxu1 %v3075_v4  ;;  %2670 = vmatprep.mubr.msk.f32.mxu1 %vm2736_vm2, %v2735_v14 }
 0xdd4   :  { %v2060_v34 = vpop.f32.mrf.mxu1 }
 0xdd5   :  { %v2064_v20 = vadd.f32 %v2060_v34, %v1816_v18 }
 0xdd6   :  { %v2653_v23 = vpop.f32.mrf.mxu1 }
 0xdd8   :  { %v2233_v25 = vpop.f32.mrf.mxu1 }
 0xdd9   :  { %2671 = vmatmul.mubr.msk.f32.vlgmr.msra.gmra.mxu1 %vm351_vm3, %v2233_v25 }
 0xdda   :  { %v2667_v26 = vpop.f32.mrf.mxu1 }
 0xe99   :  { %v2306_v24 = vpop.f32.mrf.mxu1 }
 0xe9a   :  { %v2310_v8 = vadd.f32 %v2306_v24, %v2064_v20 }
 0xe9b   :  { %v2672_v28 = vpop.f32.mrf.mxu1 }
 0xe9c   :  { %v2311_v29 = vadd.f32 %v3107_v49, %v2310_v8 }
 0xe9e   :  { %2313 = vst.msk [vmem:[#allocation2 + $0x8] sm:$0xff] %vm72_vm1, %v2311_v29 }
 0xe9f   :  { %2724 = shalt.err (!%p2721_p4)
}
 0xea0   :  { %s2741_s26 = smov 128   ;;  %s2742_s1 = smov 8  }
 0xea1   :  { %2325 = dma.vmem_to_hbm [thread:$0]  %s2320_s24, 256, %s3200_s10, [#allocation3], %s2741_s26, %s2741_s26, %s2742_s1  }
 0xea2   :  { %2733 = dma.done.wait [#allocation3], 256  }
 0xea3   :  { %2734 = vsyncadd [#allocation3], 4294967040 }
 0xea4   :  { %2329 = vsyncpa [#allocation3], 1 }

</bundles_post_ra>
